<compile_context>
chip_gen: v7x
topology: tpu7x:2x2x1
jax: 0.10.0
libtpu: 0.0.40
codegen_flags: <defaults>
</compile_context>

<pallas_src>
import functools

import jax
import jax.numpy as jnp
import numpy as np
from jax.experimental import pallas as pl
from jax.experimental.pallas import tpu as pltpu

BN_EPS = 1e-5


def _round_up(x, m):
    return (x + m - 1) // m * m


def _hw_vmem_bytes():
    """Physical VMEM per TensorCore; conservative (v7x) fallback."""
    try:
        return int(pltpu.get_tpu_info().vmem_capacity_bytes)
    except Exception:
        return 64 * 2**20


# --------------------------------------------------------------------------
# Kernel: two folded (Linear+BN)+ReLU branches, elementwise product, fc head.
# --------------------------------------------------------------------------
def _bilinear_kernel(x0_ref, x1_ref, w0_ref, w1_ref, wfc_ref,
                     shifts_ref, bfc_ref, out_ref):
    # Branch 0: folded (Linear + eval BatchNorm) -> ReLU. One MXU matmul.
    h0 = jnp.dot(x0_ref[...], w0_ref[...], preferred_element_type=jnp.float32)
    h0 = jnp.maximum(h0 + shifts_ref[0:1, :], 0.0)

    # Branch 1: same.
    h1 = jnp.dot(x1_ref[...], w1_ref[...], preferred_element_type=jnp.float32)
    h1 = jnp.maximum(h1 + shifts_ref[1:2, :], 0.0)

    # torch.prod over the stacked branch axis == elementwise product.
    p = (h0 * h1).astype(wfc_ref.dtype)

    # Classifier head (lane-padded width, so stores are unmasked vst).
    res = jnp.dot(p, wfc_ref[...], preferred_element_type=jnp.float32)
    out_ref[...] = (res + bfc_ref[...]).astype(out_ref.dtype)


# --------------------------------------------------------------------------
# One-time parameter preparation (do this at load time, NOT per forward).
# --------------------------------------------------------------------------
def fold_bilinear_params(params, *, compute_dtype=jnp.bfloat16,
                         lane_multiple=256):
    """Fold eval-mode BatchNorm1d into the Linear layers, cast to the compute
    dtype, and pad the classifier to a lane-dense width.

    params = (w0, b0, g0, be0, m0, v0, w1, b1, g1, be1, m1, v1, wfc, bfc)
    with linear weights pre-transposed to (in_features, out_features)
    (i.e. PyTorch's weight.T).

    Returns (folded_params, num_classes) where
    folded_params = (w0f, w1f, wfc_p, shifts, bfc_p).
    """
    (w0, b0, g0, be0, m0, v0,
     w1, b1, g1, be1, m1, v1,
     wfc, bfc) = params
    f32 = jnp.float32
    E, C = wfc.shape

    # scale = gamma * rsqrt(var + eps);  W' = W * scale (column-wise)
    # shift = (b - mean) * scale + beta
    s0 = g0.astype(f32) * jax.lax.rsqrt(v0.astype(f32) + BN_EPS)
    s1 = g1.astype(f32) * jax.lax.rsqrt(v1.astype(f32) + BN_EPS)
    w0f = (w0.astype(f32) * s0[None, :]).astype(compute_dtype)
    w1f = (w1.astype(f32) * s1[None, :]).astype(compute_dtype)
    sh0 = (b0.astype(f32) - m0.astype(f32)) * s0 + be0.astype(f32)
    sh1 = (b1.astype(f32) - m1.astype(f32)) * s1 + be1.astype(f32)
    shifts = jnp.stack([sh0, sh1], axis=0)                      # (2, E) f32

    Cp = _round_up(C, lane_multiple)
    wfc_p = jnp.zeros((E, Cp), compute_dtype).at[:, :C].set(
        wfc.astype(compute_dtype))
    bfc_p = jnp.zeros((1, Cp), f32).at[0, :C].set(bfc.astype(f32))

    return (w0f, w1f, wfc_p, shifts, bfc_p), C


# --------------------------------------------------------------------------
# Forward.
# --------------------------------------------------------------------------
@functools.partial(
    jax.jit,
    static_argnames=("num_classes", "tile_b", "out_dtype",
                     "single_buffer_weights"))
def _forward(x0, x1, folded_params, *, num_classes, tile_b, out_dtype,
             single_buffer_weights):
    w0f, w1f, wfc_p, shifts, bfc_p = folded_params
    B, D0 = x0.shape
    _, D1 = x1.shape
    E = w0f.shape[1]
    Cp = wfc_p.shape[1]
    cdt = w0f.dtype

    # Activations to the compute dtype (no batch padding; Pallas masks the
    # ragged last block).
    x0c = x0.astype(cdt)
    x1c = x1.astype(cdt)

    # Batch tiling:
    #  * don't over-tile tiny batches,
    #  * keep >= 2 grid steps when B allows so the "parallel" batch axis can
    #    be sharded across both TensorCores on v7x.
    tb = max(8, min(int(tile_b), _round_up(B, 8)))
    tb = min(tb, max(128, _round_up(_round_up(B, 16) // 2, 8)))
    grid = (pl.cdiv(B, tb),)

    # ---- VMEM budget (generation-aware) + scheduler cost hint. ----
    elt = jnp.dtype(cdt).itemsize
    out_elt = jnp.dtype(out_dtype).itemsize
    n_wbuf = 1 if single_buffer_weights else 2
    weight_bytes = n_wbuf * ((D0 + D1) * E * elt + E * Cp * elt
                             + (2 * E + Cp) * 4)
    act_bytes = 2 * tb * (D0 + D1) * elt + 2 * tb * Cp * out_elt
    tmp_bytes = 4 * tb * max(E, Cp) * 4
    hw_cap = _hw_vmem_bytes()
    vmem_limit = weight_bytes + act_bytes + tmp_bytes + 16 * 2**20
    vmem_limit = int(min(max(vmem_limit, 32 * 2**20), hw_cap - 4 * 2**20))
    # TODO(synk): if even bf16 + single-buffered weights exceed v7x's 64 MiB
    # (much larger models), add a reduction grid axis over E ("arbitrary",
    # last) with an f32 accumulator and stream (D, tE)/(tE, Cp) weight slabs.

    cost = pl.CostEstimate(
        flops=int(2 * B * E * (D0 + D1 + Cp) + 4 * B * E + 2 * B * Cp),
        transcendentals=0,
        bytes_accessed=int((D0 + D1) * E * elt + E * Cp * elt
                           + (2 * E + Cp) * 4
                           + B * (D0 + D1) * elt + B * Cp * out_elt),
    )

    # ---- Block specs. ----
    x0_spec = pl.BlockSpec((tb, D0), lambda i: (i, 0))
    x1_spec = pl.BlockSpec((tb, D1), lambda i: (i, 0))

    res_kw = {"pipeline_mode": pl.Buffered(1)} if single_buffer_weights else {}

    def resident(shape):
        # Constant block index across the grid -> single buffer is enough.
        return pl.BlockSpec(shape, lambda i: (0,) * len(shape), **res_kw)

    in_specs = [
        x0_spec, x1_spec,
        resident((D0, E)), resident((D1, E)), resident((E, Cp)),
        resident((2, E)), resident((1, Cp)),
    ]
    out_spec = pl.BlockSpec((tb, Cp), lambda i: (i, 0))

    out = pl.pallas_call(
        _bilinear_kernel,
        out_shape=jax.ShapeDtypeStruct((B, Cp), out_dtype),
        grid_spec=pltpu.PrefetchScalarGridSpec(
            num_scalar_prefetch=0,
            grid=grid,
            in_specs=in_specs,
            out_specs=out_spec,
        ),
        compiler_params=pltpu.CompilerParams(
            dimension_semantics=("parallel",),
            vmem_limit_bytes=vmem_limit,
        ),
        cost_estimate=cost,
    )(x0c, x1c, w0f, w1f, wfc_p, shifts, bfc_p)

    return out[:, :num_classes]


def bilinear_one_layer(feats, folded_params, num_classes, *, tile_b=512,
                       out_dtype=jnp.float32, single_buffer_weights=True):
    """BilinearOneLayer forward from pre-folded params (see
    fold_bilinear_params). feats = (x0, x1)."""
    x0, x1 = feats
    try:
        return _forward(x0, x1, folded_params, num_classes=num_classes,
                        tile_b=tile_b, out_dtype=out_dtype,
                        single_buffer_weights=single_buffer_weights)
    except Exception:
        if not single_buffer_weights:
            raise
        # Fallback for jax versions that reject pipeline_mode on the
        # top-level pallas_call specs: default double-buffering.
        return _forward(x0, x1, folded_params, num_classes=num_classes,
                        tile_b=tile_b, out_dtype=out_dtype,
                        single_buffer_weights=False)


# --------------------------------------------------------------------------
# Pure-JAX reference (mirrors the PyTorch eval-mode forward, no folding).
# --------------------------------------------------------------------------
def _reference(feats, params):
    x0, x1 = feats
    (w0, b0, g0, be0, m0, v0,
     w1, b1, g1, be1, m1, v1,
     wfc, bfc) = params
    h0 = x0 @ w0 + b0
    h0 = (h0 - m0) * g0 / jnp.sqrt(v0 + BN_EPS) + be0
    h0 = jnp.maximum(h0, 0.0)
    h1 = x1 @ w1 + b1
    h1 = (h1 - m1) * g1 / jnp.sqrt(v1 + BN_EPS) + be1
    h1 = jnp.maximum(h1, 0.0)
    return (h0 * h1) @ wfc + bfc


if __name__ == "__main__":
    # Small shapes consistent with the module (net_dim=[D0, D1], embed_dim=E,
    # num_classes=C), scaled down from [2048, 2048] / 1024 / 414.  B is not a
    # multiple of 8 and C is not a multiple of 128 on purpose, to exercise the
    # ragged-batch-block and lane-padding paths.
    B, D0, D1, E, C = 12, 256, 256, 128, 110

    key = jax.random.PRNGKey(0)
    ks = jax.random.split(key, 16)

    def lin_w(k, fan_in, fan_out):
        return (jax.random.normal(k, (fan_in, fan_out), jnp.float32)
                / np.sqrt(fan_in)).astype(jnp.float32)

    x0 = jax.random.normal(ks[0], (B, D0), jnp.float32)
    x1 = jax.random.normal(ks[1], (B, D1), jnp.float32)

    w0 = lin_w(ks[2], D0, E)
    b0 = 0.01 * jax.random.normal(ks[3], (E,), jnp.float32)
    g0 = 1.0 + 0.1 * jax.random.normal(ks[4], (E,), jnp.float32)
    be0 = 0.05 * jax.random.normal(ks[5], (E,), jnp.float32)
    m0 = 0.1 * jax.random.normal(ks[6], (E,), jnp.float32)
    v0 = 0.5 + jax.random.uniform(ks[7], (E,), jnp.float32)

    w1 = lin_w(ks[8], D1, E)
    b1 = 0.01 * jax.random.normal(ks[9], (E,), jnp.float32)
    g1 = 1.0 + 0.1 * jax.random.normal(ks[10], (E,), jnp.float32)
    be1 = 0.05 * jax.random.normal(ks[11], (E,), jnp.float32)
    m1 = 0.1 * jax.random.normal(ks[12], (E,), jnp.float32)
    v1 = 0.5 + jax.random.uniform(ks[13], (E,), jnp.float32)

    wfc = lin_w(ks[14], E, C)
    bfc = 0.01 * jax.random.normal(ks[15], (C,), jnp.float32)

    params = (w0, b0, g0, be0, m0, v0,
              w1, b1, g1, be1, m1, v1,
              wfc, bfc)

    ref = _reference((x0, x1), params)

    # f32 compute path (tight tolerance; BN folding only reorders scaling).
    folded_f32, ncls = fold_bilinear_params(params, compute_dtype=jnp.float32)
    out_f32 = jax.block_until_ready(
        bilinear_one_layer((x0, x1), folded_f32, ncls))
    np.testing.assert_allclose(np.asarray(out_f32), np.asarray(ref),
                               rtol=1e-4, atol=1e-5)

    # bf16 weights/activations (default) with f32 MXU accumulation.
    folded_bf16, ncls = fold_bilinear_params(params)   # compute_dtype=bf16
    out_bf16 = jax.block_until_ready(
        bilinear_one_layer((x0, x1), folded_bf16, ncls))
    np.testing.assert_allclose(np.asarray(out_bf16), np.asarray(ref),
                               rtol=5e-2, atol=5e-2)

    print("KERNEL_OK")
</pallas_src>

<mosaic_0001>
module attributes {stable_mosaic.version = 11 : i64} {
  func.func @_bilinear_kernel(%arg0: i32, %arg1: memref<16x256xf32, #tpu.memory_space<vmem>>, %arg2: memref<16x256xf32, #tpu.memory_space<vmem>>, %arg3: memref<256x128xf32, #tpu.memory_space<vmem>>, %arg4: memref<256x128xf32, #tpu.memory_space<vmem>>, %arg5: memref<128x256xf32, #tpu.memory_space<vmem>>, %arg6: memref<2x128xf32, #tpu.memory_space<vmem>>, %arg7: memref<1x256xf32, #tpu.memory_space<vmem>>, %arg8: memref<16x256xf32, #tpu.memory_space<vmem>>) attributes {dimension_semantics = [#tpu.dimension_semantics<parallel>], iteration_bounds = array<i64: 1>, scalar_prefetch = 0 : i64, scratch_operands = 0 : i64, tpu.core_type = #tpu.core_type<tc>, window_params = [{transform_indices = @transform_0, window_bounds = array<i64: 16, 256>}, {transform_indices = @transform_1, window_bounds = array<i64: 16, 256>}, {pipeline_mode = #tpu.pipeline_mode<synchronous>, transform_indices = @transform_2, window_bounds = array<i64: 256, 128>}, {pipeline_mode = #tpu.pipeline_mode<synchronous>, transform_indices = @transform_3, window_bounds = array<i64: 256, 128>}, {pipeline_mode = #tpu.pipeline_mode<synchronous>, transform_indices = @transform_4, window_bounds = array<i64: 128, 256>}, {pipeline_mode = #tpu.pipeline_mode<synchronous>, transform_indices = @transform_5, window_bounds = array<i64: 2, 128>}, {pipeline_mode = #tpu.pipeline_mode<synchronous>, transform_indices = @transform_6, window_bounds = array<i64: 1, 256>}, {transform_indices = @transform_7, window_bounds = array<i64: 16, 256>}]} {
    %c0 = arith.constant 0 : index
    %c0_0 = arith.constant 0 : index
    %0 = vector.load %arg1[%c0, %c0_0] : memref<16x256xf32, #tpu.memory_space<vmem>>, vector<16x256xf32>
    %c0_1 = arith.constant 0 : index
    %c0_2 = arith.constant 0 : index
    %1 = vector.load %arg3[%c0_1, %c0_2] : memref<256x128xf32, #tpu.memory_space<vmem>>, vector<256x128xf32>
    %cst = arith.constant dense<0.000000e+00> : vector<16x128xf32>
    %2 = tpu.matmul %0, %1, %cst {dimension_numbers = #tpu.dot_dimension_numbers<[1], [0], [0], [1], [0, 0, 1, 1], [], []>} : vector<16x256xf32>, vector<256x128xf32>, vector<16x128xf32> -> vector<16x128xf32>
    %c0_3 = arith.constant 0 : index
    %c0_4 = arith.constant 0 : index
    %3 = vector.load %arg6[%c0_3, %c0_4] : memref<2x128xf32, #tpu.memory_space<vmem>>, vector<1x128xf32>
    %4 = vector.broadcast %3 : vector<1x128xf32> to vector<16x128xf32>
    %5 = arith.addf %2, %4 : vector<16x128xf32>
    %cst_5 = arith.constant 0.000000e+00 : f32
    %6 = vector.broadcast %cst_5 : f32 to vector<16x128xf32>
    %7 = arith.maximumf %5, %6 : vector<16x128xf32>
    %c0_6 = arith.constant 0 : index
    %c0_7 = arith.constant 0 : index
    %8 = vector.load %arg2[%c0_6, %c0_7] : memref<16x256xf32, #tpu.memory_space<vmem>>, vector<16x256xf32>
    %c0_8 = arith.constant 0 : index
    %c0_9 = arith.constant 0 : index
    %9 = vector.load %arg4[%c0_8, %c0_9] : memref<256x128xf32, #tpu.memory_space<vmem>>, vector<256x128xf32>
    %cst_10 = arith.constant dense<0.000000e+00> : vector<16x128xf32>
    %10 = tpu.matmul %8, %9, %cst_10 {dimension_numbers = #tpu.dot_dimension_numbers<[1], [0], [0], [1], [0, 0, 1, 1], [], []>} : vector<16x256xf32>, vector<256x128xf32>, vector<16x128xf32> -> vector<16x128xf32>
    %c1 = arith.constant 1 : index
    %c0_11 = arith.constant 0 : index
    %11 = vector.load %arg6[%c1, %c0_11] : memref<2x128xf32, #tpu.memory_space<vmem>>, vector<1x128xf32>
    %12 = vector.broadcast %11 : vector<1x128xf32> to vector<16x128xf32>
    %13 = arith.addf %10, %12 : vector<16x128xf32>
    %cst_12 = arith.constant 0.000000e+00 : f32
    %14 = vector.broadcast %cst_12 : f32 to vector<16x128xf32>
    %15 = arith.maximumf %13, %14 : vector<16x128xf32>
    %16 = arith.mulf %7, %15 : vector<16x128xf32>
    %c0_13 = arith.constant 0 : index
    %c0_14 = arith.constant 0 : index
    %17 = vector.load %arg5[%c0_13, %c0_14] : memref<128x256xf32, #tpu.memory_space<vmem>>, vector<128x256xf32>
    %cst_15 = arith.constant dense<0.000000e+00> : vector<16x256xf32>
    %18 = tpu.matmul %16, %17, %cst_15 {dimension_numbers = #tpu.dot_dimension_numbers<[1], [0], [0], [1], [0, 0, 1, 1], [], []>} : vector<16x128xf32>, vector<128x256xf32>, vector<16x256xf32> -> vector<16x256xf32>
    %c0_16 = arith.constant 0 : index
    %c0_17 = arith.constant 0 : index
    %19 = vector.load %arg7[%c0_16, %c0_17] : memref<1x256xf32, #tpu.memory_space<vmem>>, vector<1x256xf32>
    %20 = vector.broadcast %19 : vector<1x256xf32> to vector<16x256xf32>
    %21 = arith.addf %18, %20 : vector<16x256xf32>
    %c0_18 = arith.constant 0 : index
    %c0_19 = arith.constant 0 : index
    %22 = vector.load %arg8[%c0_18, %c0_19] : memref<16x256xf32, #tpu.memory_space<vmem>>, vector<16x256xf32>
    tpu.vector_store %arg8[%c0_18, %c0_19], %21 {strides = array<i32>} : memref<16x256xf32, #tpu.memory_space<vmem>>, vector<16x256xf32>,
    return
  }
  func.func @transform_0(%arg0: i32) -> (i32, i32) {
    %c0_i32 = arith.constant 0 : i32
    %c0_i32_0 = arith.constant 0 : i32
    return %arg0, %c0_i32 : i32, i32
  }
  func.func @transform_1(%arg0: i32) -> (i32, i32) {
    %c0_i32 = arith.constant 0 : i32
    %c0_i32_0 = arith.constant 0 : i32
    return %arg0, %c0_i32 : i32, i32
  }
  func.func @transform_2(%arg0: i32) -> (i32, i32) {
    %c0_i32 = arith.constant 0 : i32
    %c0_i32_0 = arith.constant 0 : i32
    %c0_i32_1 = arith.constant 0 : i32
    return %c0_i32, %c0_i32_0 : i32, i32
  }
  func.func @transform_3(%arg0: i32) -> (i32, i32) {
    %c0_i32 = arith.constant 0 : i32
    %c0_i32_0 = arith.constant 0 : i32
    %c0_i32_1 = arith.constant 0 : i32
    return %c0_i32, %c0_i32_0 : i32, i32
  }
  func.func @transform_4(%arg0: i32) -> (i32, i32) {
    %c0_i32 = arith.constant 0 : i32
    %c0_i32_0 = arith.constant 0 : i32
    %c0_i32_1 = arith.constant 0 : i32
    return %c0_i32, %c0_i32_0 : i32, i32
  }
  func.func @transform_5(%arg0: i32) -> (i32, i32) {
    %c0_i32 = arith.constant 0 : i32
    %c0_i32_0 = arith.constant 0 : i32
    %c0_i32_1 = arith.constant 0 : i32
    return %c0_i32, %c0_i32_0 : i32, i32
  }
  func.func @transform_6(%arg0: i32) -> (i32, i32) {
    %c0_i32 = arith.constant 0 : i32
    %c0_i32_0 = arith.constant 0 : i32
    %c0_i32_1 = arith.constant 0 : i32
    return %c0_i32, %c0_i32_0 : i32, i32
  }
  func.func @transform_7(%arg0: i32) -> (i32, i32) {
    %c0_i32 = arith.constant 0 : i32
    %c0_i32_0 = arith.constant 0 : i32
    return %arg0, %c0_i32 : i32, i32
  }
}

module attributes {stable_mosaic.version = 11 : i64} {
  func.func @_bilinear_kernel(%arg0: i32, %arg1: memref<16x256xf32, #tpu.memory_space<vmem>>, %arg2: memref<16x256xf32, #tpu.memory_space<vmem>>, %arg3: memref<256x128xf32, #tpu.memory_space<vmem>>, %arg4: memref<256x128xf32, #tpu.memory_space<vmem>>, %arg5: memref<128x256xf32, #tpu.memory_space<vmem>>, %arg6: memref<2x128xf32, #tpu.memory_space<vmem>>, %arg7: memref<1x256xf32, #tpu.memory_space<vmem>>, %arg8: memref<16x256xf32, #tpu.memory_space<vmem>>) attributes {dimension_semantics = [#tpu.dimension_semantics<parallel>], iteration_bounds = array<i64: 1>, scalar_prefetch = 0 : i64, scratch_operands = 0 : i64, tpu.core_type = #tpu.core_type<tc>, window_params = [{transform_indices = @transform_0, window_bounds = array<i64: 16, 256>}, {transform_indices = @transform_1, window_bounds = array<i64: 16, 256>}, {pipeline_mode = #tpu.pipeline_mode<synchronous>, transform_indices = @transform_2, window_bounds = array<i64: 256, 128>}, {pipeline_mode = #tpu.pipeline_mode<synchronous>, transform_indices = @transform_3, window_bounds = array<i64: 256, 128>}, {pipeline_mode = #tpu.pipeline_mode<synchronous>, transform_indices = @transform_4, window_bounds = array<i64: 128, 256>}, {pipeline_mode = #tpu.pipeline_mode<synchronous>, transform_indices = @transform_5, window_bounds = array<i64: 2, 128>}, {pipeline_mode = #tpu.pipeline_mode<synchronous>, transform_indices = @transform_6, window_bounds = array<i64: 1, 256>}, {transform_indices = @transform_7, window_bounds = array<i64: 16, 256>}]} {
    %c0 = arith.constant 0 : index
    %c0_0 = arith.constant 0 : index
    %0 = vector.load %arg1[%c0, %c0_0] : memref<16x256xf32, #tpu.memory_space<vmem>>, vector<16x256xf32>
    %c0_1 = arith.constant 0 : index
    %c0_2 = arith.constant 0 : index
    %1 = vector.load %arg3[%c0_1, %c0_2] : memref<256x128xf32, #tpu.memory_space<vmem>>, vector<256x128xf32>
    %cst = arith.constant dense<0.000000e+00> : vector<16x128xf32>
    %2 = tpu.matmul %0, %1, %cst {dimension_numbers = #tpu.dot_dimension_numbers<[1], [0], [0], [1], [0, 0, 1, 1], [], []>} : vector<16x256xf32>, vector<256x128xf32>, vector<16x128xf32> -> vector<16x128xf32>
    %c0_3 = arith.constant 0 : index
    %c0_4 = arith.constant 0 : index
    %3 = vector.load %arg6[%c0_3, %c0_4] : memref<2x128xf32, #tpu.memory_space<vmem>>, vector<1x128xf32>
    %4 = vector.broadcast %3 : vector<1x128xf32> to vector<16x128xf32>
    %5 = arith.addf %2, %4 : vector<16x128xf32>
    %cst_5 = arith.constant 0.000000e+00 : f32
    %6 = vector.broadcast %cst_5 : f32 to vector<16x128xf32>
    %7 = arith.maximumf %5, %6 : vector<16x128xf32>
    %c0_6 = arith.constant 0 : index
    %c0_7 = arith.constant 0 : index
    %8 = vector.load %arg2[%c0_6, %c0_7] : memref<16x256xf32, #tpu.memory_space<vmem>>, vector<16x256xf32>
    %c0_8 = arith.constant 0 : index
    %c0_9 = arith.constant 0 : index
    %9 = vector.load %arg4[%c0_8, %c0_9] : memref<256x128xf32, #tpu.memory_space<vmem>>, vector<256x128xf32>
    %cst_10 = arith.constant dense<0.000000e+00> : vector<16x128xf32>
    %10 = tpu.matmul %8, %9, %cst_10 {dimension_numbers = #tpu.dot_dimension_numbers<[1], [0], [0], [1], [0, 0, 1, 1], [], []>} : vector<16x256xf32>, vector<256x128xf32>, vector<16x128xf32> -> vector<16x128xf32>
    %c1 = arith.constant 1 : index
    %c0_11 = arith.constant 0 : index
    %11 = vector.load %arg6[%c1, %c0_11] : memref<2x128xf32, #tpu.memory_space<vmem>>, vector<1x128xf32>
    %12 = vector.broadcast %11 : vector<1x128xf32> to vector<16x128xf32>
    %13 = arith.addf %10, %12 : vector<16x128xf32>
    %cst_12 = arith.constant 0.000000e+00 : f32
    %14 = vector.broadcast %cst_12 : f32 to vector<16x128xf32>
    %15 = arith.maximumf %13, %14 : vector<16x128xf32>
    %16 = arith.mulf %7, %15 : vector<16x128xf32>
    %c0_13 = arith.constant 0 : index
    %c0_14 = arith.constant 0 : index
    %17 = vector.load %arg5[%c0_13, %c0_14] : memref<128x256xf32, #tpu.memory_space<vmem>>, vector<128x256xf32>
    %cst_15 = arith.constant dense<0.000000e+00> : vector<16x256xf32>
    %18 = tpu.matmul %16, %17, %cst_15 {dimension_numbers = #tpu.dot_dimension_numbers<[1], [0], [0], [1], [0, 0, 1, 1], [], []>} : vector<16x128xf32>, vector<128x256xf32>, vector<16x256xf32> -> vector<16x256xf32>
    %c0_16 = arith.constant 0 : index
    %c0_17 = arith.constant 0 : index
    %19 = vector.load %arg7[%c0_16, %c0_17] : memref<1x256xf32, #tpu.memory_space<vmem>>, vector<1x256xf32>
    %20 = vector.broadcast %19 : vector<1x256xf32> to vector<16x256xf32>
    %21 = arith.addf %18, %20 : vector<16x256xf32>
    %c0_18 = arith.constant 0 : index
    %c0_19 = arith.constant 0 : index
    %22 = vector.load %arg8[%c0_18, %c0_19] : memref<16x256xf32, #tpu.memory_space<vmem>>, vector<16x256xf32>
    tpu.vector_store %arg8[%c0_18, %c0_19], %21 {strides = array<i32>} : memref<16x256xf32, #tpu.memory_space<vmem>>, vector<16x256xf32>,
    return
  }
  func.func @transform_0(%arg0: i32) -> (i32, i32) {
    %c0_i32 = arith.constant 0 : i32
    %c0_i32_0 = arith.constant 0 : i32
    return %arg0, %c0_i32 : i32, i32
  }
  func.func @transform_1(%arg0: i32) -> (i32, i32) {
    %c0_i32 = arith.constant 0 : i32
    %c0_i32_0 = arith.constant 0 : i32
    return %arg0, %c0_i32 : i32, i32
  }
  func.func @transform_2(%arg0: i32) -> (i32, i32) {
    %c0_i32 = arith.constant 0 : i32
    %c0_i32_0 = arith.constant 0 : i32
    %c0_i32_1 = arith.constant 0 : i32
    return %c0_i32, %c0_i32_0 : i32, i32
  }
  func.func @transform_3(%arg0: i32) -> (i32, i32) {
    %c0_i32 = arith.constant 0 : i32
    %c0_i32_0 = arith.constant 0 : i32
    %c0_i32_1 = arith.constant 0 : i32
    return %c0_i32, %c0_i32_0 : i32, i32
  }
  func.func @transform_4(%arg0: i32) -> (i32, i32) {
    %c0_i32 = arith.constant 0 : i32
    %c0_i32_0 = arith.constant 0 : i32
    %c0_i32_1 = arith.constant 0 : i32
    return %c0_i32, %c0_i32_0 : i32, i32
  }
  func.func @transform_5(%arg0: i32) -> (i32, i32) {
    %c0_i32 = arith.constant 0 : i32
    %c0_i32_0 = arith.constant 0 : i32
    %c0_i32_1 = arith.constant 0 : i32
    return %c0_i32, %c0_i32_0 : i32, i32
  }
  func.func @transform_6(%arg0: i32) -> (i32, i32) {
    %c0_i32 = arith.constant 0 : i32
    %c0_i32_0 = arith.constant 0 : i32
    %c0_i32_1 = arith.constant 0 : i32
    return %c0_i32, %c0_i32_0 : i32, i32
  }
  func.func @transform_7(%arg0: i32) -> (i32, i32) {
    %c0_i32 = arith.constant 0 : i32
    %c0_i32_0 = arith.constant 0 : i32
    return %arg0, %c0_i32 : i32, i32
  }
}

</mosaic_0001>

<bundles_post_ra>
// kernel: _forward.1
= control target key start
LH: loop header
LB: loop body
LE: loop exit
PB: predicated region body
PF: predicated region fallthrough
CT: control target
= control target key end

     0   :  { %12 = vsyncpa [#allocation3], 0  ;;  %s926_s0 = inlined_call_operand.hbm [shape: f32[12,256], index: 0, kind: input, shape index: {}]   ;;  %s927_s1 = inlined_call_operand.hbm [shape: f32[12,256], index: 1, kind: input, shape index: {}]   ;;  %s928_s2 = inlined_call_operand.hbm [shape: f32[256,128], index: 2, kind: input, shape index: {}]   ;;  %s929_s3 = inlined_call_operand.hbm [shape: f32[256,128], index: 3, kind: input, shape index: {}]   ;;  %s930_s4 = inlined_call_operand.hbm [shape: f32[128,256], index: 4, kind: input, shape index: {}]   ;;  %s931_s5 = inlined_call_operand.vmem [shape: f32[2,128], index: 5, kind: input, shape index: {}]   ;;  %s932_s6 = inlined_call_operand.vmem [shape: f32[1,256], index: 6, kind: input, shape index: {}]   ;;  %s933_s7 = inlined_call_operand.vmem [shape: f32[12,256], index: 7, kind: output, shape index: {}]  }
   0x1   :  { %13 = vsyncpa [#allocation5], 0 }
   0x2   :  { %14 = vsyncpa [#allocation8], 0  ;;  %s780_s24 = smov [#allocation4]   ;;  %s664_s28 = scalar_lea.hbm %s927_s1, 512 }
   0x3   :  { %s32_s25 = sshll.u32 %s780_s24, 4  ;;  %p665_p0 = scmp.ne.s32.totalorder %s927_s1, %s664_s28  ;;  %s33_s25 = int_to_ptr.vmem [resolvable:$true] %s32_s25 }
   0x4   :  { %p668_p1 = scmp.lt.u32.totalorder %s664_s28, %s927_s1 }
   0x6   :  { %p670_p2 = pnand %p668_p1, %p665_p0 }
   0x8   :  { %673 = shalt.err (!%p670_p2)
}
   0x9   :  { %s674_s10 = scalar_lea.vmem %s33_s25, 512  ;;  %p679_p4 = scmp.lt.s32.totalorder %s33_s25, %s33_s25 }
   0xa   :  { %p675_p3 = scmp.ne.s32.totalorder %s33_s25, %s674_s10  ;;  %p680_p5 = scmp.lt.s32.totalorder %s674_s10, %s674_s10 }
   0xc   :  { %p681_p6 = por %p680_p5, %p679_p4 }
   0xe   :  { %p682_p7 = pnand %p681_p6, %p675_p3 }
  0x10   :  { %685 = shalt.err (!%p682_p7)
}
  0x11   :  { %s781_s11 = smov 256   ;;  %s782_s12 = smov 16  }
  0x12   :  { %38 = dma.hbm_to_vmem [thread:$0]  %s927_s1, 512, %s33_s25, [#allocation5], %s781_s11, %s781_s11, %s782_s12  }
  0x13   :  { %s783_s15 = smov [#allocation7]   ;;  %s784_s17 = smov [#allocation2]  }
  0x14   :  { %s56_s16 = sshll.u32 %s783_s15, 4  ;;  %s20_s18 = sshll.u32 %s784_s17, 4  ;;  %s57_s16 = int_to_ptr.vmem [resolvable:$true] %s56_s16  ;;  %s21_s18 = int_to_ptr.vmem [resolvable:$true] %s20_s18 }
  0x15   :  { %s686_s21 = scalar_lea.hbm %s929_s3, 4096 }
  0x16   :  { %p687_p8 = scmp.ne.s32.totalorder %s929_s3, %s686_s21  ;;  %p690_p9 = scmp.lt.u32.totalorder %s686_s21, %s929_s3 }
  0x18   :  { %p692_p10 = pnand %p690_p9, %p687_p8 }
  0x1a   :  { %695 = shalt.err (!%p692_p10)
}
  0x1b   :  { %s696_s1 = scalar_lea.vmem %s57_s16, 4096  ;;  %p701_p12 = scmp.lt.s32.totalorder %s57_s16, %s57_s16 }
  0x1c   :  { %p697_p11 = scmp.ne.s32.totalorder %s57_s16, %s696_s1  ;;  %p702_p13 = scmp.lt.s32.totalorder %s696_s1, %s696_s1 }
  0x1e   :  { %p703_p0 = por %p702_p13, %p701_p12 }
  0x20   :  { %p704_p1 = pnand %p703_p0, %p697_p11 }
  0x22   :  { %707 = shalt.err (!%p704_p1)
}
  0x23   :  { %s785_s25 = smov 128   ;;  %s786_s27 = smov 8  }
  0x24   :  { %62 = dma.hbm_to_vmem [thread:$0]  %s929_s3, 4096, %s57_s16, [#allocation8], %s785_s25, %s785_s25, %s786_s27  }
  0x25   :  { %s708_s9 = scalar_lea.hbm %s926_s0, 512 }
  0x26   :  { %p709_p2 = scmp.ne.s32.totalorder %s926_s0, %s708_s9  ;;  %p712_p3 = scmp.lt.u32.totalorder %s708_s9, %s926_s0 }
  0x28   :  { %p714_p4 = pnand %p712_p3, %p709_p2 }
  0x2a   :  { %717 = shalt.err (!%p714_p4)
}
  0x2b   :  { %s718_s17 = scalar_lea.vmem %s21_s18, 512  ;;  %p723_p6 = scmp.lt.s32.totalorder %s21_s18, %s21_s18 }
  0x2c   :  { %p719_p5 = scmp.ne.s32.totalorder %s21_s18, %s718_s17  ;;  %p724_p7 = scmp.lt.s32.totalorder %s718_s17, %s718_s17 }
  0x2e   :  { %p725_p8 = por %p724_p7, %p723_p6 }
  0x30   :  { %p726_p9 = pnand %p725_p8, %p719_p5 }
  0x32   :  { %729 = shalt.err (!%p726_p9)
}
  0x33   :  { %26 = dma.hbm_to_vmem [thread:$0]  %s926_s0, 512, %s21_s18, [#allocation3], %s781_s11, %s781_s11, %s782_s12  }
  0x34   :  { %s787_s19 = smov [#allocation6]   ;;  %s788_s21 = smov [#allocation9]  }
  0x35   :  { %s44_s20 = sshll.u32 %s787_s19, 4  ;;  %s68_s22 = sshll.u32 %s788_s21, 4  ;;  %s45_s20 = int_to_ptr.vmem [resolvable:$true] %s44_s20  ;;  %s69_s22 = int_to_ptr.vmem [resolvable:$true] %s68_s22 }
  0x36   :  { %s730_s26 = scalar_lea.hbm %s928_s2, 4096 }
  0x37   :  { %p731_p10 = scmp.ne.s32.totalorder %s928_s2, %s730_s26  ;;  %p734_p11 = scmp.lt.u32.totalorder %s730_s26, %s928_s2 }
  0x39   :  { %p736_p12 = pnand %p734_p11, %p731_p10 }
  0x3b   :  { %739 = shalt.err (!%p736_p12)
}
  0x3c   :  { %s740_s0 = scalar_lea.vmem %s45_s20, 4096  ;;  %p745_p0 = scmp.lt.s32.totalorder %s45_s20, %s45_s20 }
  0x3d   :  { %p741_p13 = scmp.ne.s32.totalorder %s45_s20, %s740_s0  ;;  %p746_p1 = scmp.lt.s32.totalorder %s740_s0, %s740_s0 }
  0x3f   :  { %p747_p2 = por %p746_p1, %p745_p0 }
  0x41   :  { %p748_p3 = pnand %p747_p2, %p741_p13 }
  0x43   :  { %751 = shalt.err (!%p748_p3)
}
  0x44   :  { %50 = dma.hbm_to_vmem [thread:$0]  %s928_s2, 4096, %s45_s20, [#allocation5], %s785_s25, %s785_s25, %s786_s27  }
  0x45   :  { %s752_s13 = scalar_lea.hbm %s930_s4, 4096 }
  0x46   :  { %p753_p4 = scmp.ne.s32.totalorder %s930_s4, %s752_s13  ;;  %p756_p5 = scmp.lt.u32.totalorder %s752_s13, %s930_s4 }
  0x48   :  { %p758_p6 = pnand %p756_p5, %p753_p4 }
  0x4a   :  { %761 = shalt.err (!%p758_p6)
}
  0x4b   :  { %s762_s16 = scalar_lea.vmem %s69_s22, 4096  ;;  %p767_p8 = scmp.lt.s32.totalorder %s69_s22, %s69_s22 }
  0x4c   :  { %p763_p7 = scmp.ne.s32.totalorder %s69_s22, %s762_s16  ;;  %p768_p9 = scmp.lt.s32.totalorder %s762_s16, %s762_s16 }
  0x4e   :  { %p769_p10 = por %p768_p9, %p767_p8 }
  0x50   :  { %p770_p11 = pnand %p769_p10, %p763_p7 }
  0x52   :  { %773 = shalt.err (!%p770_p11)
}
  0x53   :  { %74 = dma.hbm_to_vmem [thread:$0]  %s930_s4, 4096, %s69_s22, [#allocation8], %s781_s11, %s781_s11, %s782_s12  }
  0x54   :  { %774 = dma.done.wait [#allocation3], 512  }
  0x55   :  { %775 = vsyncadd [#allocation3], 4294966784 }
  0x56   :  { %776 = dma.done.wait [#allocation5], 4608  }
  0x57   :  { %777 = vsyncadd [#allocation5], 4294962688 }
  0x58   :  { %778 = dma.done.wait [#allocation8], 8192  }
  0x59   :  { %779 = vsyncadd [#allocation8], 4294959104  ;;  %v114_v0 = vld [vmem:[#allocation6 + $0x80] sm:$0xff]  ;;  %v115_v1 = vld [vmem:[#allocation6 + $0x88] sm:$0xff] }
  0x5a   :  { %v232_v2 = vld [vmem:[#allocation7 + $0x80] sm:$0xff]  ;;  %v542_v3 = vpack.c.bf16 %v115_v1, %v114_v0  ;;  %v233_v4 = vld [vmem:[#allocation7 + $0x88] sm:$0xff]  ;;  %v116_v11 = vld [vmem:[#allocation6 + $0x90] sm:$0xff] }
  0x5b   :  { %v98_v5 = vld [vmem:[#allocation6] sm:$0xff]  ;;  %v99_v6 = vld [vmem:[#allocation6 + $0x8] sm:$0xff]  ;;  %v574_v7 = vpack.c.bf16 %v233_v4, %v232_v2  ;;  %v117_v13 = vld [vmem:[#allocation6 + $0x98] sm:$0xff] }
  0x5c   :  { %v544_v8 = vpack.c.bf16 %v99_v6, %v98_v5  ;;  %v216_v9 = vld [vmem:[#allocation7] sm:$0xff]  ;;  %v217_v10 = vld [vmem:[#allocation7 + $0x8] sm:$0xff]  ;;  %543 = vmatprep.subr.bf16.mxu0 %v542_v3  ;;  %v234_v14 = vld [vmem:[#allocation7 + $0x90] sm:$0xff]  ;;  %v546_v16 = vpack.c.bf16 %v117_v13, %v116_v11 }
  0x5d   :  { %v576_v12 = vpack.c.bf16 %v217_v10, %v216_v9  ;;  %v235_v15 = vld [vmem:[#allocation7 + $0x98] sm:$0xff]  ;;  %575 = vmatprep.subr.bf16.mxu1 %v574_v7  ;;  %v100_v18 = vld [vmem:[#allocation6 + $0x10] sm:$0xff]  ;;  %v118_v23 = vld [vmem:[#allocation6 + $0xa0] sm:$0xff] }
  0x5e   :  { %545 = vmatpush3.bf16.msra.mxu0 %v544_v8  ;;  %v578_v17 = vpack.c.bf16 %v235_v15, %v234_v14  ;;  %v101_v19 = vld [vmem:[#allocation6 + $0x18] sm:$0xff]  ;;  %v218_v20 = vld [vmem:[#allocation7 + $0x10] sm:$0xff]  ;;  %v119_v24 = vld [vmem:[#allocation6 + $0xa8] sm:$0xff] }
  0x5f   :  { %577 = vmatpush3.bf16.msra.mxu1 %v576_v12  ;;  %v548_v21 = vpack.c.bf16 %v101_v19, %v100_v18  ;;  %v219_v22 = vld [vmem:[#allocation7 + $0x18] sm:$0xff]  ;;  %547 = vmatprep.subr.bf16.mxu0 %v546_v16  ;;  %v550_v26 = vpack.c.bf16 %v119_v24, %v118_v23  ;;  %v236_v27 = vld [vmem:[#allocation7 + $0xa0] sm:$0xff]  ;;  %v237_v28 = vld [vmem:[#allocation7 + $0xa8] sm:$0xff] }
  0x60   :  { %579 = vmatprep.subr.bf16.mxu1 %v578_v17  ;;  %v580_v25 = vpack.c.bf16 %v219_v22, %v218_v20  ;;  %v102_v29 = vld [vmem:[#allocation6 + $0x20] sm:$0xff]  ;;  %v582_v30 = vpack.c.bf16 %v237_v28, %v236_v27  ;;  %v103_v31 = vld [vmem:[#allocation6 + $0x28] sm:$0xff]  ;;  %v120_v35 = vld [vmem:[#allocation6 + $0xb0] sm:$0xff] }
  0x61   :  { %v220_v32 = vld [vmem:[#allocation7 + $0x20] sm:$0xff]  ;;  %v221_v33 = vld [vmem:[#allocation7 + $0x28] sm:$0xff]  ;;  %v552_v34 = vpack.c.bf16 %v103_v31, %v102_v29  ;;  %v121_v36 = vld [vmem:[#allocation6 + $0xb8] sm:$0xff] }
  0x62   :  { %549 = vmatpush3.bf16.msra.mxu0 %v548_v21  ;;  %v238_v37 = vld [vmem:[#allocation7 + $0xb0] sm:$0xff]  ;;  %v584_v38 = vpack.c.bf16 %v221_v33, %v220_v32  ;;  %v554_v39 = vpack.c.bf16 %v121_v36, %v120_v35  ;;  %v239_v40 = vld [vmem:[#allocation7 + $0xb8] sm:$0xff]  ;;  %v122_v46 = vld [vmem:[#allocation6 + $0xc0] sm:$0xff] }
  0x63   :  { %581 = vmatpush3.bf16.msra.mxu1 %v580_v25  ;;  %551 = vmatprep.subr.bf16.mxu0 %v550_v26  ;;  %v104_v41 = vld [vmem:[#allocation6 + $0x30] sm:$0xff]  ;;  %v105_v42 = vld [vmem:[#allocation6 + $0x38] sm:$0xff]  ;;  %v586_v43 = vpack.c.bf16 %v239_v40, %v238_v37  ;;  %v123_v47 = vld [vmem:[#allocation6 + $0xc8] sm:$0xff] }
  0x64   :  { %583 = vmatprep.subr.bf16.mxu1 %v582_v30  ;;  %v222_v44 = vld [vmem:[#allocation7 + $0x30] sm:$0xff]  ;;  %v223_v45 = vld [vmem:[#allocation7 + $0x38] sm:$0xff]  ;;  %v240_v48 = vld [vmem:[#allocation7 + $0xc0] sm:$0xff]  ;;  %v556_v50 = vpack.c.bf16 %v105_v42, %v104_v41  ;;  %v558_v52 = vpack.c.bf16 %v123_v47, %v122_v46 }
  0x65   :  { %v241_v49 = vld [vmem:[#allocation7 + $0xc8] sm:$0xff]  ;;  %v588_v51 = vpack.c.bf16 %v223_v45, %v222_v44  ;;  %v106_v53 = vld [vmem:[#allocation6 + $0x40] sm:$0xff]  ;;  %v124_v58 = vld [vmem:[#allocation6 + $0xd0] sm:$0xff] }
  0x66   :  { %553 = vmatpush3.bf16.msra.mxu0 %v552_v34  ;;  %v107_v54 = vld [vmem:[#allocation6 + $0x48] sm:$0xff]  ;;  %v224_v55 = vld [vmem:[#allocation7 + $0x40] sm:$0xff]  ;;  %v590_v56 = vpack.c.bf16 %v241_v49, %v240_v48  ;;  %v125_v59 = vld [vmem:[#allocation6 + $0xd8] sm:$0xff] }
  0x67   :  { %585 = vmatpush3.bf16.msra.mxu1 %v584_v38  ;;  %555 = vmatprep.subr.bf16.mxu0 %v554_v39  ;;  %v225_v57 = vld [vmem:[#allocation7 + $0x48] sm:$0xff]  ;;  %v242_v60 = vld [vmem:[#allocation7 + $0xd0] sm:$0xff]  ;;  %v243_v61 = vld [vmem:[#allocation7 + $0xd8] sm:$0xff]  ;;  %v560_v62 = vpack.c.bf16 %v107_v54, %v106_v53  ;;  %v562_v0 = vpack.c.bf16 %v125_v59, %v124_v58 }
  0x68   :  { %587 = vmatprep.subr.bf16.mxu1 %v586_v43  ;;  %v592_v63 = vpack.c.bf16 %v225_v57, %v224_v55  ;;  %v108_v1 = vld [vmem:[#allocation6 + $0x50] sm:$0xff]  ;;  %v109_v2 = vld [vmem:[#allocation6 + $0x58] sm:$0xff]  ;;  %v594_v4 = vpack.c.bf16 %v243_v61, %v242_v60  ;;  %v126_v6 = vld [vmem:[#allocation6 + $0xe0] sm:$0xff] }
  0x69   :  { %v226_v3 = vld [vmem:[#allocation7 + $0x50] sm:$0xff]  ;;  %v227_v5 = vld [vmem:[#allocation7 + $0x58] sm:$0xff]  ;;  %v127_v7 = vld [vmem:[#allocation6 + $0xe8] sm:$0xff]  ;;  %v564_v10 = vpack.c.bf16 %v109_v2, %v108_v1 }
  0x6a   :  { %557 = vmatpush3.bf16.msra.mxu0 %v556_v50  ;;  %v244_v8 = vld [vmem:[#allocation7 + $0xe0] sm:$0xff]  ;;  %v245_v9 = vld [vmem:[#allocation7 + $0xe8] sm:$0xff]  ;;  %v596_v13 = vpack.c.bf16 %v227_v5, %v226_v3  ;;  %v566_v14 = vpack.c.bf16 %v127_v7, %v126_v6  ;;  %v128_v20 = vld [vmem:[#allocation6 + $0xf0] sm:$0xff] }
  0x6b   :  { %589 = vmatpush3.bf16.msra.mxu1 %v588_v51  ;;  %559 = vmatprep.subr.bf16.mxu0 %v558_v52  ;;  %v110_v11 = vld [vmem:[#allocation6 + $0x60] sm:$0xff]  ;;  %v111_v12 = vld [vmem:[#allocation6 + $0x68] sm:$0xff]  ;;  %v598_v18 = vpack.c.bf16 %v245_v9, %v244_v8  ;;  %v129_v21 = vld [vmem:[#allocation6 + $0xf8] sm:$0xff] }
  0x6c   :  { %591 = vmatprep.subr.bf16.mxu1 %v590_v56  ;;  %v228_v15 = vld [vmem:[#allocation7 + $0x60] sm:$0xff]  ;;  %v95_v16 = vld [vmem:[#allocation2 + $0x8] sm:$0xff]  ;;  %v246_v22 = vld [vmem:[#allocation7 + $0xf0] sm:$0xff]  ;;  %v568_v24 = vpack.c.bf16 %v111_v12, %v110_v11  ;;  %v570_v26 = vpack.c.bf16 %v129_v21, %v128_v20 }
  0x6d   :  { %v213_v17 = vld [vmem:[#allocation4 + $0x8] sm:$0xff]  ;;  %199 = vmatprep.mubr.f32.mxu0 %v95_v16  ;;  %v247_v23 = vld [vmem:[#allocation7 + $0xf8] sm:$0xff]  ;;  %v112_v27 = vld [vmem:[#allocation6 + $0x70] sm:$0xff] }
  0x6e   :  { %561 = vmatpush3.bf16.msra.mxu0 %v560_v62  ;;  %v229_v19 = vld [vmem:[#allocation7 + $0x68] sm:$0xff]  ;;  %317 = vmatprep.mubr.f32.mxu1 %v213_v17  ;;  %v113_v28 = vld [vmem:[#allocation6 + $0x78] sm:$0xff]  ;;  %v230_v29 = vld [vmem:[#allocation7 + $0x70] sm:$0xff]  ;;  %v602_v30 = vpack.c.bf16 %v247_v23, %v246_v22 }
  0x6f   :  { %593 = vmatpush3.bf16.msra.mxu1 %v592_v63  ;;  %563 = vmatprep.subr.bf16.mxu0 %v562_v0  ;;  %v600_v25 = vpack.c.bf16 %v229_v19, %v228_v15  ;;  %v231_v31 = vld [vmem:[#allocation7 + $0x78] sm:$0xff]  ;;  %v333_v32 = vld [vmem:[#allocation9 + $0x8] sm:$0xff]  ;;  %v572_v34 = vpack.c.bf16 %v113_v28, %v112_v27  ;;  %v332_v37 = vld [vmem:[#allocation9] sm:$0xff] }
  0x70   :  { %595 = vmatprep.subr.bf16.mxu1 %v594_v4  ;;  %v335_v33 = vld [vmem:[#allocation9 + $0x18] sm:$0xff]  ;;  %v604_v35 = vpack.c.bf16 %v231_v31, %v230_v29  ;;  %v334_v38 = vld [vmem:[#allocation9 + $0x10] sm:$0xff]  ;;  %v337_v39 = vld [vmem:[#allocation9 + $0x28] sm:$0xff] }
  0x71   :  { %v606_v36 = vpack.c.bf16 %v335_v33, %v333_v32  ;;  %v339_v40 = vld [vmem:[#allocation9 + $0x38] sm:$0xff]  ;;  %v94_v41 = vld [vmem:[#allocation2] sm:$0xff]  ;;  %v608_v44 = vpack.c.bf16 %v334_v38, %v332_v37  ;;  %v338_v48 = vld [vmem:[#allocation9 + $0x30] sm:$0xff] }
  0x72   :  { %565 = vmatpush3.bf16.msra.mxu0 %v564_v10  ;;  %v212_v42 = vld [vmem:[#allocation4] sm:$0xff]  ;;  %v97_v43 = vld [vmem:[#allocation2 + $0x18] sm:$0xff]  ;;  %v610_v46 = vpack.c.bf16 %v339_v40, %v337_v39  ;;  %v341_v49 = vld [vmem:[#allocation9 + $0x48] sm:$0xff] }
  0x73   :  { %597 = vmatpush3.bf16.msra.mxu1 %v596_v13  ;;  %567 = vmatprep.subr.bf16.mxu0 %v566_v14  ;;  %v215_v45 = vld [vmem:[#allocation4 + $0x18] sm:$0xff]  ;;  %v336_v47 = vld [vmem:[#allocation9 + $0x20] sm:$0xff]  ;;  %v96_v51 = vld [vmem:[#allocation2 + $0x10] sm:$0xff] }
  0x74   :  { %599 = vmatprep.subr.bf16.mxu1 %v598_v18  ;;  %v343_v50 = vld [vmem:[#allocation9 + $0x58] sm:$0xff]  ;;  %v214_v52 = vld [vmem:[#allocation4 + $0x10] sm:$0xff]  ;;  %v612_v53 = vpack.c.bf16 %v338_v48, %v336_v47  ;;  %v340_v55 = vld [vmem:[#allocation9 + $0x40] sm:$0xff] }
  0x75   :  { %v614_v54 = vpack.c.bf16 %v343_v50, %v341_v49  ;;  %v342_v56 = vld [vmem:[#allocation9 + $0x50] sm:$0xff]  ;;  %v345_v57 = vld [vmem:[#allocation9 + $0x68] sm:$0xff]  ;;  %v347_v58 = vld [vmem:[#allocation9 + $0x78] sm:$0xff]  ;;  %v366_v49 = vlaneseq }
  0x76   :  { %569 = vmatpush3.bf16.msra.mxu0 %v568_v24  ;;  %v616_v59 = vpack.c.bf16 %v342_v56, %v340_v55  ;;  %v618_v60 = vpack.c.bf16 %v347_v58, %v345_v57  ;;  %v344_v61 = vld [vmem:[#allocation9 + $0x60] sm:$0xff]  ;;  %v346_v62 = vld [vmem:[#allocation9 + $0x70] sm:$0xff]  ;;  %v349_v63 = vld [vmem:[#allocation9 + $0x88] sm:$0xff]  ;;  %v789_v24 = vmov 0.0  }
  0x77   :  { %601 = vmatpush3.bf16.msra.mxu1 %v600_v25  ;;  %571 = vmatprep.subr.bf16.mxu0 %v570_v26  ;;  %v351_v0 = vld [vmem:[#allocation9 + $0x98] sm:$0xff]  ;;  %v620_v1 = vpack.c.bf16 %v346_v62, %v344_v61  ;;  %v348_v3 = vld [vmem:[#allocation9 + $0x80] sm:$0xff]  ;;  %v350_v4 = vld [vmem:[#allocation9 + $0x90] sm:$0xff]  ;;  %v367_v50 = vshrl.u32 %v366_v49, 7 }
  0x78   :  { %603 = vmatprep.subr.bf16.mxu1 %v602_v30  ;;  %v622_v2 = vpack.c.bf16 %v351_v0, %v349_v63  ;;  %v353_v5 = vld [vmem:[#allocation9 + $0xa8] sm:$0xff]  ;;  %v355_v6 = vld [vmem:[#allocation9 + $0xb8] sm:$0xff]  ;;  %v624_v7 = vpack.c.bf16 %v350_v4, %v348_v3  ;;  %v352_v9 = vld [vmem:[#allocation9 + $0xa0] sm:$0xff] }
  0x79   :  { %v626_v8 = vpack.c.bf16 %v355_v6, %v353_v5  ;;  %v354_v10 = vld [vmem:[#allocation9 + $0xb0] sm:$0xff]  ;;  %v357_v12 = vld [vmem:[#allocation9 + $0xc8] sm:$0xff]  ;;  %v359_v13 = vld [vmem:[#allocation9 + $0xd8] sm:$0xff] }
  0x7a   :  { %573 = vmatpush3.bf16.msra.mxu0 %v572_v34  ;;  %v628_v11 = vpack.c.bf16 %v354_v10, %v352_v9  ;;  %v630_v14 = vpack.c.bf16 %v359_v13, %v357_v12  ;;  %v356_v15 = vld [vmem:[#allocation9 + $0xc0] sm:$0xff]  ;;  %v358_v16 = vld [vmem:[#allocation9 + $0xd0] sm:$0xff]  ;;  %v361_v18 = vld [vmem:[#allocation9 + $0xe8] sm:$0xff] }
  0x7b   :  { %605 = vmatpush3.bf16.msra.mxu1 %v604_v35  ;;  %607 = vmatprep.subr.bf16.mxu0 %v606_v36  ;;  %v632_v17 = vpack.c.bf16 %v358_v16, %v356_v15  ;;  %v363_v19 = vld [vmem:[#allocation9 + $0xf8] sm:$0xff]  ;;  %v360_v21 = vld [vmem:[#allocation9 + $0xe0] sm:$0xff]  ;;  %v362_v22 = vld [vmem:[#allocation9 + $0xf0] sm:$0xff] }
  0x7c   :  { %638 = vmatprep.subr.bf16.mxu1 %v606_v36  ;;  %v634_v20 = vpack.c.bf16 %v363_v19, %v361_v18  ;;  %v636_v23 = vpack.c.bf16 %v362_v22, %v360_v21  ;;  %v464_v27 = vld [vmem:[%s931_s5] ss:$0 sm:$0xff]  ;;  %v465_v30 = vld [vmem:[%s931_s5 + $0x1] ss:$0 sm:$0xff] }
  0x7d   :  { %200 = vmatmul.mubr.f32.vlgmr.msra.gmra.mrb[0].mxu0 %v94_v41 }
  0x7e   :  { %318 = vmatmul.mubr.f32.vlgmr.msra.gmra.mrb[0].mxu1 %v212_v42  ;;  %204 = vmatprep.mubr.f32.mxu0 %v97_v43 }
  0x7f   :  { %322 = vmatprep.mubr.f32.mxu1 %v215_v45  ;;  %609 = vmatpush1.bf16.msra.mxu0 %v608_v44 }
  0x80   :  { %611 = vmatprep.subr.bf16.mxu0 %v610_v46  ;;  %646 = vmatpush1.bf16.msra.mxu1 %v608_v44 }
  0x81   :  { %205 = vmatmul.mubr.f32.gmra.mrb[2].mxu0 %v96_v51  ;;  %639 = vmatprep.subr.bf16.mxu1 %v610_v46  ;;  %v368_v51 = vsub.s32 0, %v367_v50 }
  0x82   :  { %323 = vmatmul.mubr.f32.gmra.mrb[2].mxu1 %v214_v52  ;;  %440 = vmatprep.mubr.f32.mxu0 %v789_v24  ;;  %v364_v52 = vld [vmem:[%s932_s6] sm:$0x3] }
  0x83   :  { %613 = vmatpush1.bf16.msra.mxu0 %v612_v53  ;;  %446 = vmatprep.mubr.f32.mxu1 %v789_v24 }
  0x84   :  { %615 = vmatprep.subr.bf16.mxu0 %v614_v54  ;;  %647 = vmatpush1.bf16.msra.mxu1 %v612_v53  ;;  %v372_v53 = vsub.s32 1, %v367_v50 }
  0x85   :  { %640 = vmatprep.subr.bf16.mxu1 %v614_v54  ;;  %v369_v54 = vrot.slane %v364_v52, %v368_v51 }
  0x86   :  { %v373_v55 = vrot.slane %v364_v52, %v372_v53 }
  0x87   :  { %617 = vmatpush1.bf16.msra.mxu0 %v616_v59 }
  0x88   :  { %619 = vmatprep.subr.bf16.mxu0 %v618_v60  ;;  %648 = vmatpush1.bf16.msra.mxu1 %v616_v59 }
  0x89   :  { %641 = vmatprep.subr.bf16.mxu1 %v618_v60 }
  0x8b   :  { %621 = vmatpush1.bf16.msra.mxu0 %v620_v1 }
  0x8c   :  { %623 = vmatprep.subr.bf16.mxu0 %v622_v2  ;;  %649 = vmatpush1.bf16.msra.mxu1 %v620_v1 }
  0x8d   :  { %642 = vmatprep.subr.bf16.mxu1 %v622_v2 }
  0x8f   :  { %625 = vmatpush1.bf16.msra.mxu0 %v624_v7 }
  0x90   :  { %627 = vmatprep.subr.bf16.mxu0 %v626_v8  ;;  %650 = vmatpush1.bf16.msra.mxu1 %v624_v7 }
  0x91   :  { %643 = vmatprep.subr.bf16.mxu1 %v626_v8 }
  0x93   :  { %629 = vmatpush1.bf16.msra.mxu0 %v628_v11 }
  0x94   :  { %651 = vmatpush1.bf16.msra.mxu1 %v628_v11  ;;  %631 = vmatprep.subr.bf16.mxu0 %v630_v14 }
  0x95   :  { %644 = vmatprep.subr.bf16.mxu1 %v630_v14 }
  0x97   :  { %633 = vmatpush1.bf16.msra.mxu0 %v632_v17 }
  0x98   :  { %652 = vmatpush1.bf16.msra.mxu1 %v632_v17  ;;  %635 = vmatprep.subr.bf16.mxu0 %v634_v20 }
  0x99   :  { %645 = vmatprep.subr.bf16.mxu1 %v634_v20 }
  0x9b   :  { %637 = vmatpush1.bf16.msra.mxu0 %v636_v23 }
  0x9c   :  { %653 = vmatpush1.bf16.msra.mxu1 %v636_v23 }
 0x150   :  { %v498_v25 = vpop.f32.mrb[0].mxu0 }
 0x151   :  { %v536_v26 = vpop.f32.mrb[0].mxu1  ;;  %v499_v28 = vpop.f32.mrb[1].mxu0 }
 0x152   :  { %v500_v29 = vadd.f32 %v499_v28, %v498_v25  ;;  %v537_v31 = vpop.f32.mrb[1].mxu1 }
 0x153   :  { %v538_v32 = vadd.f32 %v537_v31, %v536_v26 }
 0x154   :  { %v202_v33 = vadd.f32 %v500_v29, %v464_v27  ;;  %v501_v34 = vpop.f32.mrb[2].mxu0 }
 0x155   :  { %v320_v35 = vadd.f32 %v538_v32, %v465_v30  ;;  %v539_v36 = vpop.f32.mrb[2].mxu1  ;;  %v502_v37 = vpop.f32.mrb[3].mxu0 }
 0x156   :  { %v210_v38 = vmax.f32 %v202_v33, 0.0  ;;  %v503_v39 = vadd.f32 %v502_v37, %v501_v34  ;;  %v540_v40 = vpop.f32.mrb[3].mxu1 }
 0x157   :  { %v328_v41 = vmax.f32 %v320_v35, 0.0  ;;  %v541_v42 = vadd.f32 %v540_v40, %v539_v36 }
 0x158   :  { %v207_v43 = vadd.f32 %v503_v39, %v464_v27 }
 0x159   :  { %v330_v44 = vmul.f32 %v328_v41, %v210_v38  ;;  %v325_v45 = vadd.f32 %v541_v42, %v465_v30 }
 0x15a   :  { %v211_v46 = vmax.f32 %v207_v43, 0.0 }
 0x15b   :  { %v329_v47 = vmax.f32 %v325_v45, 0.0  ;;  %441 = vmatmul.mubr.f32.vlgmr.msra.gmra.mrb[4].mxu0 %v330_v44 }
 0x15d   :  { %v331_v48 = vmul.f32 %v329_v47, %v211_v46 }
 0x15f   :  { %447 = vmatmul.mubr.f32.vlgmr.msra.gmra.mrb[4].mxu1 %v331_v48 }
 0x22e   :  { %v442_v56 = vpop.f32.mrb[4].mxu0 }
 0x22f   :  { %v443_v57 = vadd.f32 %v442_v56, %v369_v54  ;;  %v444_v58 = vpop.f32.mrb[5].mxu0 }
 0x230   :  { %v445_v59 = vadd.f32 %v444_v58, %v373_v55 }
 0x231   :  { %453 = vst [vmem:[%s933_s7] sm:$0xff] %v443_v57 }
 0x232   :  { %454 = vst [vmem:[%s933_s7 + $0x8] sm:$0xff] %v445_v59  ;;  %v448_v60 = vpop.f32.mrb[4].mxu1 }
 0x233   :  { %v449_v61 = vadd.f32 %v448_v60, %v369_v54  ;;  %v450_v62 = vpop.f32.mrb[5].mxu1 }
 0x234   :  { %v451_v63 = vadd.f32 %v450_v62, %v373_v55 }
 0x235   :  { %455 = vst [vmem:[%s933_s7 + $0x10] sm:$0xff] %v449_v61 }
 0x236   :  { %456 = vst [vmem:[%s933_s7 + $0x18] sm:$0xff] %v451_v63 }
 0x237   :  { %461 = vsyncpa [#allocation3], 1 }
 0x238   :  { %462 = vsyncpa [#allocation5], 1 }
 0x239   :  { %463 = vsyncpa [#allocation8], 1 }

// kernel: _forward.1
= control target key start
LH: loop header
LB: loop body
LE: loop exit
PB: predicated region body
PF: predicated region fallthrough
CT: control target
= control target key end

     0   :  { %12 = vsyncpa [#allocation3], 0  ;;  %s926_s0 = inlined_call_operand.hbm [shape: f32[12,256], index: 0, kind: input, shape index: {}]   ;;  %s927_s1 = inlined_call_operand.hbm [shape: f32[12,256], index: 1, kind: input, shape index: {}]   ;;  %s928_s2 = inlined_call_operand.hbm [shape: f32[256,128], index: 2, kind: input, shape index: {}]   ;;  %s929_s3 = inlined_call_operand.hbm [shape: f32[256,128], index: 3, kind: input, shape index: {}]   ;;  %s930_s4 = inlined_call_operand.hbm [shape: f32[128,256], index: 4, kind: input, shape index: {}]   ;;  %s931_s5 = inlined_call_operand.vmem [shape: f32[2,128], index: 5, kind: input, shape index: {}]   ;;  %s932_s6 = inlined_call_operand.vmem [shape: f32[1,256], index: 6, kind: input, shape index: {}]   ;;  %s933_s7 = inlined_call_operand.vmem [shape: f32[12,256], index: 7, kind: output, shape index: {}]  }
   0x1   :  { %13 = vsyncpa [#allocation5], 0 }
   0x2   :  { %14 = vsyncpa [#allocation8], 0  ;;  %s780_s24 = smov [#allocation4]   ;;  %s664_s28 = scalar_lea.hbm %s927_s1, 512 }
   0x3   :  { %s32_s25 = sshll.u32 %s780_s24, 4  ;;  %p665_p0 = scmp.ne.s32.totalorder %s927_s1, %s664_s28  ;;  %s33_s25 = int_to_ptr.vmem [resolvable:$true] %s32_s25 }
   0x4   :  { %p668_p1 = scmp.lt.u32.totalorder %s664_s28, %s927_s1 }
   0x6   :  { %p670_p2 = pnand %p668_p1, %p665_p0 }
   0x8   :  { %673 = shalt.err (!%p670_p2)
}
   0x9   :  { %s674_s10 = scalar_lea.vmem %s33_s25, 512  ;;  %p679_p4 = scmp.lt.s32.totalorder %s33_s25, %s33_s25 }
   0xa   :  { %p675_p3 = scmp.ne.s32.totalorder %s33_s25, %s674_s10  ;;  %p680_p5 = scmp.lt.s32.totalorder %s674_s10, %s674_s10 }
   0xc   :  { %p681_p6 = por %p680_p5, %p679_p4 }
   0xe   :  { %p682_p7 = pnand %p681_p6, %p675_p3 }
  0x10   :  { %685 = shalt.err (!%p682_p7)
}
  0x11   :  { %s781_s11 = smov 256   ;;  %s782_s12 = smov 16  }
  0x12   :  { %38 = dma.hbm_to_vmem [thread:$0]  %s927_s1, 512, %s33_s25, [#allocation5], %s781_s11, %s781_s11, %s782_s12  }
  0x13   :  { %s783_s15 = smov [#allocation7]   ;;  %s784_s17 = smov [#allocation2]  }
  0x14   :  { %s56_s16 = sshll.u32 %s783_s15, 4  ;;  %s20_s18 = sshll.u32 %s784_s17, 4  ;;  %s57_s16 = int_to_ptr.vmem [resolvable:$true] %s56_s16  ;;  %s21_s18 = int_to_ptr.vmem [resolvable:$true] %s20_s18 }
  0x15   :  { %s686_s21 = scalar_lea.hbm %s929_s3, 4096 }
  0x16   :  { %p687_p8 = scmp.ne.s32.totalorder %s929_s3, %s686_s21  ;;  %p690_p9 = scmp.lt.u32.totalorder %s686_s21, %s929_s3 }
  0x18   :  { %p692_p10 = pnand %p690_p9, %p687_p8 }
  0x1a   :  { %695 = shalt.err (!%p692_p10)
}
  0x1b   :  { %s696_s1 = scalar_lea.vmem %s57_s16, 4096  ;;  %p701_p12 = scmp.lt.s32.totalorder %s57_s16, %s57_s16 }
  0x1c   :  { %p697_p11 = scmp.ne.s32.totalorder %s57_s16, %s696_s1  ;;  %p702_p13 = scmp.lt.s32.totalorder %s696_s1, %s696_s1 }
  0x1e   :  { %p703_p0 = por %p702_p13, %p701_p12 }
  0x20   :  { %p704_p1 = pnand %p703_p0, %p697_p11 }
  0x22   :  { %707 = shalt.err (!%p704_p1)
}
  0x23   :  { %s785_s25 = smov 128   ;;  %s786_s27 = smov 8  }
  0x24   :  { %62 = dma.hbm_to_vmem [thread:$0]  %s929_s3, 4096, %s57_s16, [#allocation8], %s785_s25, %s785_s25, %s786_s27  }
  0x25   :  { %s708_s9 = scalar_lea.hbm %s926_s0, 512 }
  0x26   :  { %p709_p2 = scmp.ne.s32.totalorder %s926_s0, %s708_s9  ;;  %p712_p3 = scmp.lt.u32.totalorder %s708_s9, %s926_s0 }
  0x28   :  { %p714_p4 = pnand %p712_p3, %p709_p2 }
  0x2a   :  { %717 = shalt.err (!%p714_p4)
}
  0x2b   :  { %s718_s17 = scalar_lea.vmem %s21_s18, 512  ;;  %p723_p6 = scmp.lt.s32.totalorder %s21_s18, %s21_s18 }
  0x2c   :  { %p719_p5 = scmp.ne.s32.totalorder %s21_s18, %s718_s17  ;;  %p724_p7 = scmp.lt.s32.totalorder %s718_s17, %s718_s17 }
  0x2e   :  { %p725_p8 = por %p724_p7, %p723_p6 }
  0x30   :  { %p726_p9 = pnand %p725_p8, %p719_p5 }
  0x32   :  { %729 = shalt.err (!%p726_p9)
}
  0x33   :  { %26 = dma.hbm_to_vmem [thread:$0]  %s926_s0, 512, %s21_s18, [#allocation3], %s781_s11, %s781_s11, %s782_s12  }
  0x34   :  { %s787_s19 = smov [#allocation6]   ;;  %s788_s21 = smov [#allocation9]  }
  0x35   :  { %s44_s20 = sshll.u32 %s787_s19, 4  ;;  %s68_s22 = sshll.u32 %s788_s21, 4  ;;  %s45_s20 = int_to_ptr.vmem [resolvable:$true] %s44_s20  ;;  %s69_s22 = int_to_ptr.vmem [resolvable:$true] %s68_s22 }
  0x36   :  { %s730_s26 = scalar_lea.hbm %s928_s2, 4096 }
  0x37   :  { %p731_p10 = scmp.ne.s32.totalorder %s928_s2, %s730_s26  ;;  %p734_p11 = scmp.lt.u32.totalorder %s730_s26, %s928_s2 }
  0x39   :  { %p736_p12 = pnand %p734_p11, %p731_p10 }
  0x3b   :  { %739 = shalt.err (!%p736_p12)
}
  0x3c   :  { %s740_s0 = scalar_lea.vmem %s45_s20, 4096  ;;  %p745_p0 = scmp.lt.s32.totalorder %s45_s20, %s45_s20 }
  0x3d   :  { %p741_p13 = scmp.ne.s32.totalorder %s45_s20, %s740_s0  ;;  %p746_p1 = scmp.lt.s32.totalorder %s740_s0, %s740_s0 }
  0x3f   :  { %p747_p2 = por %p746_p1, %p745_p0 }
  0x41   :  { %p748_p3 = pnand %p747_p2, %p741_p13 }
  0x43   :  { %751 = shalt.err (!%p748_p3)
}
  0x44   :  { %50 = dma.hbm_to_vmem [thread:$0]  %s928_s2, 4096, %s45_s20, [#allocation5], %s785_s25, %s785_s25, %s786_s27  }
  0x45   :  { %s752_s13 = scalar_lea.hbm %s930_s4, 4096 }
  0x46   :  { %p753_p4 = scmp.ne.s32.totalorder %s930_s4, %s752_s13  ;;  %p756_p5 = scmp.lt.u32.totalorder %s752_s13, %s930_s4 }
  0x48   :  { %p758_p6 = pnand %p756_p5, %p753_p4 }
  0x4a   :  { %761 = shalt.err (!%p758_p6)
}
  0x4b   :  { %s762_s16 = scalar_lea.vmem %s69_s22, 4096  ;;  %p767_p8 = scmp.lt.s32.totalorder %s69_s22, %s69_s22 }
  0x4c   :  { %p763_p7 = scmp.ne.s32.totalorder %s69_s22, %s762_s16  ;;  %p768_p9 = scmp.lt.s32.totalorder %s762_s16, %s762_s16 }
  0x4e   :  { %p769_p10 = por %p768_p9, %p767_p8 }
  0x50   :  { %p770_p11 = pnand %p769_p10, %p763_p7 }
  0x52   :  { %773 = shalt.err (!%p770_p11)
}
  0x53   :  { %74 = dma.hbm_to_vmem [thread:$0]  %s930_s4, 4096, %s69_s22, [#allocation8], %s781_s11, %s781_s11, %s782_s12  }
  0x54   :  { %774 = dma.done.wait [#allocation3], 512  }
  0x55   :  { %775 = vsyncadd [#allocation3], 4294966784 }
  0x56   :  { %776 = dma.done.wait [#allocation5], 4608  }
  0x57   :  { %777 = vsyncadd [#allocation5], 4294962688 }
  0x58   :  { %778 = dma.done.wait [#allocation8], 8192  }
  0x59   :  { %779 = vsyncadd [#allocation8], 4294959104  ;;  %v114_v0 = vld [vmem:[#allocation6 + $0x80] sm:$0xff]  ;;  %v115_v1 = vld [vmem:[#allocation6 + $0x88] sm:$0xff] }
  0x5a   :  { %v232_v2 = vld [vmem:[#allocation7 + $0x80] sm:$0xff]  ;;  %v542_v3 = vpack.c.bf16 %v115_v1, %v114_v0  ;;  %v233_v4 = vld [vmem:[#allocation7 + $0x88] sm:$0xff]  ;;  %v116_v11 = vld [vmem:[#allocation6 + $0x90] sm:$0xff] }
  0x5b   :  { %v98_v5 = vld [vmem:[#allocation6] sm:$0xff]  ;;  %v99_v6 = vld [vmem:[#allocation6 + $0x8] sm:$0xff]  ;;  %v574_v7 = vpack.c.bf16 %v233_v4, %v232_v2  ;;  %v117_v13 = vld [vmem:[#allocation6 + $0x98] sm:$0xff] }
  0x5c   :  { %v544_v8 = vpack.c.bf16 %v99_v6, %v98_v5  ;;  %v216_v9 = vld [vmem:[#allocation7] sm:$0xff]  ;;  %v217_v10 = vld [vmem:[#allocation7 + $0x8] sm:$0xff]  ;;  %543 = vmatprep.subr.bf16.mxu0 %v542_v3  ;;  %v234_v14 = vld [vmem:[#allocation7 + $0x90] sm:$0xff]  ;;  %v546_v16 = vpack.c.bf16 %v117_v13, %v116_v11 }
  0x5d   :  { %v576_v12 = vpack.c.bf16 %v217_v10, %v216_v9  ;;  %v235_v15 = vld [vmem:[#allocation7 + $0x98] sm:$0xff]  ;;  %575 = vmatprep.subr.bf16.mxu1 %v574_v7  ;;  %v100_v18 = vld [vmem:[#allocation6 + $0x10] sm:$0xff]  ;;  %v118_v23 = vld [vmem:[#allocation6 + $0xa0] sm:$0xff] }
  0x5e   :  { %545 = vmatpush3.bf16.msra.mxu0 %v544_v8  ;;  %v578_v17 = vpack.c.bf16 %v235_v15, %v234_v14  ;;  %v101_v19 = vld [vmem:[#allocation6 + $0x18] sm:$0xff]  ;;  %v218_v20 = vld [vmem:[#allocation7 + $0x10] sm:$0xff]  ;;  %v119_v24 = vld [vmem:[#allocation6 + $0xa8] sm:$0xff] }
  0x5f   :  { %577 = vmatpush3.bf16.msra.mxu1 %v576_v12  ;;  %v548_v21 = vpack.c.bf16 %v101_v19, %v100_v18  ;;  %v219_v22 = vld [vmem:[#allocation7 + $0x18] sm:$0xff]  ;;  %547 = vmatprep.subr.bf16.mxu0 %v546_v16  ;;  %v550_v26 = vpack.c.bf16 %v119_v24, %v118_v23  ;;  %v236_v27 = vld [vmem:[#allocation7 + $0xa0] sm:$0xff]  ;;  %v237_v28 = vld [vmem:[#allocation7 + $0xa8] sm:$0xff] }
  0x60   :  { %579 = vmatprep.subr.bf16.mxu1 %v578_v17  ;;  %v580_v25 = vpack.c.bf16 %v219_v22, %v218_v20  ;;  %v102_v29 = vld [vmem:[#allocation6 + $0x20] sm:$0xff]  ;;  %v582_v30 = vpack.c.bf16 %v237_v28, %v236_v27  ;;  %v103_v31 = vld [vmem:[#allocation6 + $0x28] sm:$0xff]  ;;  %v120_v35 = vld [vmem:[#allocation6 + $0xb0] sm:$0xff] }
  0x61   :  { %v220_v32 = vld [vmem:[#allocation7 + $0x20] sm:$0xff]  ;;  %v221_v33 = vld [vmem:[#allocation7 + $0x28] sm:$0xff]  ;;  %v552_v34 = vpack.c.bf16 %v103_v31, %v102_v29  ;;  %v121_v36 = vld [vmem:[#allocation6 + $0xb8] sm:$0xff] }
  0x62   :  { %549 = vmatpush3.bf16.msra.mxu0 %v548_v21  ;;  %v238_v37 = vld [vmem:[#allocation7 + $0xb0] sm:$0xff]  ;;  %v584_v38 = vpack.c.bf16 %v221_v33, %v220_v32  ;;  %v554_v39 = vpack.c.bf16 %v121_v36, %v120_v35  ;;  %v239_v40 = vld [vmem:[#allocation7 + $0xb8] sm:$0xff]  ;;  %v122_v46 = vld [vmem:[#allocation6 + $0xc0] sm:$0xff] }
  0x63   :  { %581 = vmatpush3.bf16.msra.mxu1 %v580_v25  ;;  %551 = vmatprep.subr.bf16.mxu0 %v550_v26  ;;  %v104_v41 = vld [vmem:[#allocation6 + $0x30] sm:$0xff]  ;;  %v105_v42 = vld [vmem:[#allocation6 + $0x38] sm:$0xff]  ;;  %v586_v43 = vpack.c.bf16 %v239_v40, %v238_v37  ;;  %v123_v47 = vld [vmem:[#allocation6 + $0xc8] sm:$0xff] }
  0x64   :  { %583 = vmatprep.subr.bf16.mxu1 %v582_v30  ;;  %v222_v44 = vld [vmem:[#allocation7 + $0x30] sm:$0xff]  ;;  %v223_v45 = vld [vmem:[#allocation7 + $0x38] sm:$0xff]  ;;  %v240_v48 = vld [vmem:[#allocation7 + $0xc0] sm:$0xff]  ;;  %v556_v50 = vpack.c.bf16 %v105_v42, %v104_v41  ;;  %v558_v52 = vpack.c.bf16 %v123_v47, %v122_v46 }
  0x65   :  { %v241_v49 = vld [vmem:[#allocation7 + $0xc8] sm:$0xff]  ;;  %v588_v51 = vpack.c.bf16 %v223_v45, %v222_v44  ;;  %v106_v53 = vld [vmem:[#allocation6 + $0x40] sm:$0xff]  ;;  %v124_v58 = vld [vmem:[#allocation6 + $0xd0] sm:$0xff] }
  0x66   :  { %553 = vmatpush3.bf16.msra.mxu0 %v552_v34  ;;  %v107_v54 = vld [vmem:[#allocation6 + $0x48] sm:$0xff]  ;;  %v224_v55 = vld [vmem:[#allocation7 + $0x40] sm:$0xff]  ;;  %v590_v56 = vpack.c.bf16 %v241_v49, %v240_v48  ;;  %v125_v59 = vld [vmem:[#allocation6 + $0xd8] sm:$0xff] }
  0x67   :  { %585 = vmatpush3.bf16.msra.mxu1 %v584_v38  ;;  %555 = vmatprep.subr.bf16.mxu0 %v554_v39  ;;  %v225_v57 = vld [vmem:[#allocation7 + $0x48] sm:$0xff]  ;;  %v242_v60 = vld [vmem:[#allocation7 + $0xd0] sm:$0xff]  ;;  %v243_v61 = vld [vmem:[#allocation7 + $0xd8] sm:$0xff]  ;;  %v560_v62 = vpack.c.bf16 %v107_v54, %v106_v53  ;;  %v562_v0 = vpack.c.bf16 %v125_v59, %v124_v58 }
  0x68   :  { %587 = vmatprep.subr.bf16.mxu1 %v586_v43  ;;  %v592_v63 = vpack.c.bf16 %v225_v57, %v224_v55  ;;  %v108_v1 = vld [vmem:[#allocation6 + $0x50] sm:$0xff]  ;;  %v109_v2 = vld [vmem:[#allocation6 + $0x58] sm:$0xff]  ;;  %v594_v4 = vpack.c.bf16 %v243_v61, %v242_v60  ;;  %v126_v6 = vld [vmem:[#allocation6 + $0xe0] sm:$0xff] }
  0x69   :  { %v226_v3 = vld [vmem:[#allocation7 + $0x50] sm:$0xff]  ;;  %v227_v5 = vld [vmem:[#allocation7 + $0x58] sm:$0xff]  ;;  %v127_v7 = vld [vmem:[#allocation6 + $0xe8] sm:$0xff]  ;;  %v564_v10 = vpack.c.bf16 %v109_v2, %v108_v1 }
  0x6a   :  { %557 = vmatpush3.bf16.msra.mxu0 %v556_v50  ;;  %v244_v8 = vld [vmem:[#allocation7 + $0xe0] sm:$0xff]  ;;  %v245_v9 = vld [vmem:[#allocation7 + $0xe8] sm:$0xff]  ;;  %v596_v13 = vpack.c.bf16 %v227_v5, %v226_v3  ;;  %v566_v14 = vpack.c.bf16 %v127_v7, %v126_v6  ;;  %v128_v20 = vld [vmem:[#allocation6 + $0xf0] sm:$0xff] }
  0x6b   :  { %589 = vmatpush3.bf16.msra.mxu1 %v588_v51  ;;  %559 = vmatprep.subr.bf16.mxu0 %v558_v52  ;;  %v110_v11 = vld [vmem:[#allocation6 + $0x60] sm:$0xff]  ;;  %v111_v12 = vld [vmem:[#allocation6 + $0x68] sm:$0xff]  ;;  %v598_v18 = vpack.c.bf16 %v245_v9, %v244_v8  ;;  %v129_v21 = vld [vmem:[#allocation6 + $0xf8] sm:$0xff] }
  0x6c   :  { %591 = vmatprep.subr.bf16.mxu1 %v590_v56  ;;  %v228_v15 = vld [vmem:[#allocation7 + $0x60] sm:$0xff]  ;;  %v95_v16 = vld [vmem:[#allocation2 + $0x8] sm:$0xff]  ;;  %v246_v22 = vld [vmem:[#allocation7 + $0xf0] sm:$0xff]  ;;  %v568_v24 = vpack.c.bf16 %v111_v12, %v110_v11  ;;  %v570_v26 = vpack.c.bf16 %v129_v21, %v128_v20 }
  0x6d   :  { %v213_v17 = vld [vmem:[#allocation4 + $0x8] sm:$0xff]  ;;  %199 = vmatprep.mubr.f32.mxu0 %v95_v16  ;;  %v247_v23 = vld [vmem:[#allocation7 + $0xf8] sm:$0xff]  ;;  %v112_v27 = vld [vmem:[#allocation6 + $0x70] sm:$0xff] }
  0x6e   :  { %561 = vmatpush3.bf16.msra.mxu0 %v560_v62  ;;  %v229_v19 = vld [vmem:[#allocation7 + $0x68] sm:$0xff]  ;;  %317 = vmatprep.mubr.f32.mxu1 %v213_v17  ;;  %v113_v28 = vld [vmem:[#allocation6 + $0x78] sm:$0xff]  ;;  %v230_v29 = vld [vmem:[#allocation7 + $0x70] sm:$0xff]  ;;  %v602_v30 = vpack.c.bf16 %v247_v23, %v246_v22 }
  0x6f   :  { %593 = vmatpush3.bf16.msra.mxu1 %v592_v63  ;;  %563 = vmatprep.subr.bf16.mxu0 %v562_v0  ;;  %v600_v25 = vpack.c.bf16 %v229_v19, %v228_v15  ;;  %v231_v31 = vld [vmem:[#allocation7 + $0x78] sm:$0xff]  ;;  %v333_v32 = vld [vmem:[#allocation9 + $0x8] sm:$0xff]  ;;  %v572_v34 = vpack.c.bf16 %v113_v28, %v112_v27  ;;  %v332_v37 = vld [vmem:[#allocation9] sm:$0xff] }
  0x70   :  { %595 = vmatprep.subr.bf16.mxu1 %v594_v4  ;;  %v335_v33 = vld [vmem:[#allocation9 + $0x18] sm:$0xff]  ;;  %v604_v35 = vpack.c.bf16 %v231_v31, %v230_v29  ;;  %v334_v38 = vld [vmem:[#allocation9 + $0x10] sm:$0xff]  ;;  %v337_v39 = vld [vmem:[#allocation9 + $0x28] sm:$0xff] }
  0x71   :  { %v606_v36 = vpack.c.bf16 %v335_v33, %v333_v32  ;;  %v339_v40 = vld [vmem:[#allocation9 + $0x38] sm:$0xff]  ;;  %v94_v41 = vld [vmem:[#allocation2] sm:$0xff]  ;;  %v608_v44 = vpack.c.bf16 %v334_v38, %v332_v37  ;;  %v338_v48 = vld [vmem:[#allocation9 + $0x30] sm:$0xff] }
  0x72   :  { %565 = vmatpush3.bf16.msra.mxu0 %v564_v10  ;;  %v212_v42 = vld [vmem:[#allocation4] sm:$0xff]  ;;  %v97_v43 = vld [vmem:[#allocation2 + $0x18] sm:$0xff]  ;;  %v610_v46 = vpack.c.bf16 %v339_v40, %v337_v39  ;;  %v341_v49 = vld [vmem:[#allocation9 + $0x48] sm:$0xff] }
  0x73   :  { %597 = vmatpush3.bf16.msra.mxu1 %v596_v13  ;;  %567 = vmatprep.subr.bf16.mxu0 %v566_v14  ;;  %v215_v45 = vld [vmem:[#allocation4 + $0x18] sm:$0xff]  ;;  %v336_v47 = vld [vmem:[#allocation9 + $0x20] sm:$0xff]  ;;  %v96_v51 = vld [vmem:[#allocation2 + $0x10] sm:$0xff] }
  0x74   :  { %599 = vmatprep.subr.bf16.mxu1 %v598_v18  ;;  %v343_v50 = vld [vmem:[#allocation9 + $0x58] sm:$0xff]  ;;  %v214_v52 = vld [vmem:[#allocation4 + $0x10] sm:$0xff]  ;;  %v612_v53 = vpack.c.bf16 %v338_v48, %v336_v47  ;;  %v340_v55 = vld [vmem:[#allocation9 + $0x40] sm:$0xff] }
  0x75   :  { %v614_v54 = vpack.c.bf16 %v343_v50, %v341_v49  ;;  %v342_v56 = vld [vmem:[#allocation9 + $0x50] sm:$0xff]  ;;  %v345_v57 = vld [vmem:[#allocation9 + $0x68] sm:$0xff]  ;;  %v347_v58 = vld [vmem:[#allocation9 + $0x78] sm:$0xff]  ;;  %v366_v49 = vlaneseq }
  0x76   :  { %569 = vmatpush3.bf16.msra.mxu0 %v568_v24  ;;  %v616_v59 = vpack.c.bf16 %v342_v56, %v340_v55  ;;  %v618_v60 = vpack.c.bf16 %v347_v58, %v345_v57  ;;  %v344_v61 = vld [vmem:[#allocation9 + $0x60] sm:$0xff]  ;;  %v346_v62 = vld [vmem:[#allocation9 + $0x70] sm:$0xff]  ;;  %v349_v63 = vld [vmem:[#allocation9 + $0x88] sm:$0xff]  ;;  %v789_v24 = vmov 0.0  }
  0x77   :  { %601 = vmatpush3.bf16.msra.mxu1 %v600_v25  ;;  %571 = vmatprep.subr.bf16.mxu0 %v570_v26  ;;  %v351_v0 = vld [vmem:[#allocation9 + $0x98] sm:$0xff]  ;;  %v620_v1 = vpack.c.bf16 %v346_v62, %v344_v61  ;;  %v348_v3 = vld [vmem:[#allocation9 + $0x80] sm:$0xff]  ;;  %v350_v4 = vld [vmem:[#allocation9 + $0x90] sm:$0xff]  ;;  %v367_v50 = vshrl.u32 %v366_v49, 7 }
  0x78   :  { %603 = vmatprep.subr.bf16.mxu1 %v602_v30  ;;  %v622_v2 = vpack.c.bf16 %v351_v0, %v349_v63  ;;  %v353_v5 = vld [vmem:[#allocation9 + $0xa8] sm:$0xff]  ;;  %v355_v6 = vld [vmem:[#allocation9 + $0xb8] sm:$0xff]  ;;  %v624_v7 = vpack.c.bf16 %v350_v4, %v348_v3  ;;  %v352_v9 = vld [vmem:[#allocation9 + $0xa0] sm:$0xff] }
  0x79   :  { %v626_v8 = vpack.c.bf16 %v355_v6, %v353_v5  ;;  %v354_v10 = vld [vmem:[#allocation9 + $0xb0] sm:$0xff]  ;;  %v357_v12 = vld [vmem:[#allocation9 + $0xc8] sm:$0xff]  ;;  %v359_v13 = vld [vmem:[#allocation9 + $0xd8] sm:$0xff] }
  0x7a   :  { %573 = vmatpush3.bf16.msra.mxu0 %v572_v34  ;;  %v628_v11 = vpack.c.bf16 %v354_v10, %v352_v9  ;;  %v630_v14 = vpack.c.bf16 %v359_v13, %v357_v12  ;;  %v356_v15 = vld [vmem:[#allocation9 + $0xc0] sm:$0xff]  ;;  %v358_v16 = vld [vmem:[#allocation9 + $0xd0] sm:$0xff]  ;;  %v361_v18 = vld [vmem:[#allocation9 + $0xe8] sm:$0xff] }
  0x7b   :  { %605 = vmatpush3.bf16.msra.mxu1 %v604_v35  ;;  %607 = vmatprep.subr.bf16.mxu0 %v606_v36  ;;  %v632_v17 = vpack.c.bf16 %v358_v16, %v356_v15  ;;  %v363_v19 = vld [vmem:[#allocation9 + $0xf8] sm:$0xff]  ;;  %v360_v21 = vld [vmem:[#allocation9 + $0xe0] sm:$0xff]  ;;  %v362_v22 = vld [vmem:[#allocation9 + $0xf0] sm:$0xff] }
  0x7c   :  { %638 = vmatprep.subr.bf16.mxu1 %v606_v36  ;;  %v634_v20 = vpack.c.bf16 %v363_v19, %v361_v18  ;;  %v636_v23 = vpack.c.bf16 %v362_v22, %v360_v21  ;;  %v464_v27 = vld [vmem:[%s931_s5] ss:$0 sm:$0xff]  ;;  %v465_v30 = vld [vmem:[%s931_s5 + $0x1] ss:$0 sm:$0xff] }
  0x7d   :  { %200 = vmatmul.mubr.f32.vlgmr.msra.gmra.mrb[0].mxu0 %v94_v41 }
  0x7e   :  { %318 = vmatmul.mubr.f32.vlgmr.msra.gmra.mrb[0].mxu1 %v212_v42  ;;  %204 = vmatprep.mubr.f32.mxu0 %v97_v43 }
  0x7f   :  { %322 = vmatprep.mubr.f32.mxu1 %v215_v45  ;;  %609 = vmatpush1.bf16.msra.mxu0 %v608_v44 }
  0x80   :  { %611 = vmatprep.subr.bf16.mxu0 %v610_v46  ;;  %646 = vmatpush1.bf16.msra.mxu1 %v608_v44 }
  0x81   :  { %205 = vmatmul.mubr.f32.gmra.mrb[2].mxu0 %v96_v51  ;;  %639 = vmatprep.subr.bf16.mxu1 %v610_v46  ;;  %v368_v51 = vsub.s32 0, %v367_v50 }
  0x82   :  { %323 = vmatmul.mubr.f32.gmra.mrb[2].mxu1 %v214_v52  ;;  %440 = vmatprep.mubr.f32.mxu0 %v789_v24  ;;  %v364_v52 = vld [vmem:[%s932_s6] sm:$0x3] }
  0x83   :  { %613 = vmatpush1.bf16.msra.mxu0 %v612_v53  ;;  %446 = vmatprep.mubr.f32.mxu1 %v789_v24 }
  0x84   :  { %615 = vmatprep.subr.bf16.mxu0 %v614_v54  ;;  %647 = vmatpush1.bf16.msra.mxu1 %v612_v53  ;;  %v372_v53 = vsub.s32 1, %v367_v50 }
  0x85   :  { %640 = vmatprep.subr.bf16.mxu1 %v614_v54  ;;  %v369_v54 = vrot.slane %v364_v52, %v368_v51 }
  0x86   :  { %v373_v55 = vrot.slane %v364_v52, %v372_v53 }
  0x87   :  { %617 = vmatpush1.bf16.msra.mxu0 %v616_v59 }
  0x88   :  { %619 = vmatprep.subr.bf16.mxu0 %v618_v60  ;;  %648 = vmatpush1.bf16.msra.mxu1 %v616_v59 }
  0x89   :  { %641 = vmatprep.subr.bf16.mxu1 %v618_v60 }
  0x8b   :  { %621 = vmatpush1.bf16.msra.mxu0 %v620_v1 }
  0x8c   :  { %623 = vmatprep.subr.bf16.mxu0 %v622_v2  ;;  %649 = vmatpush1.bf16.msra.mxu1 %v620_v1 }
  0x8d   :  { %642 = vmatprep.subr.bf16.mxu1 %v622_v2 }
  0x8f   :  { %625 = vmatpush1.bf16.msra.mxu0 %v624_v7 }
  0x90   :  { %627 = vmatprep.subr.bf16.mxu0 %v626_v8  ;;  %650 = vmatpush1.bf16.msra.mxu1 %v624_v7 }
  0x91   :  { %643 = vmatprep.subr.bf16.mxu1 %v626_v8 }
  0x93   :  { %629 = vmatpush1.bf16.msra.mxu0 %v628_v11 }
  0x94   :  { %651 = vmatpush1.bf16.msra.mxu1 %v628_v11  ;;  %631 = vmatprep.subr.bf16.mxu0 %v630_v14 }
  0x95   :  { %644 = vmatprep.subr.bf16.mxu1 %v630_v14 }
  0x97   :  { %633 = vmatpush1.bf16.msra.mxu0 %v632_v17 }
  0x98   :  { %652 = vmatpush1.bf16.msra.mxu1 %v632_v17  ;;  %635 = vmatprep.subr.bf16.mxu0 %v634_v20 }
  0x99   :  { %645 = vmatprep.subr.bf16.mxu1 %v634_v20 }
  0x9b   :  { %637 = vmatpush1.bf16.msra.mxu0 %v636_v23 }
  0x9c   :  { %653 = vmatpush1.bf16.msra.mxu1 %v636_v23 }
 0x150   :  { %v498_v25 = vpop.f32.mrb[0].mxu0 }
 0x151   :  { %v536_v26 = vpop.f32.mrb[0].mxu1  ;;  %v499_v28 = vpop.f32.mrb[1].mxu0 }
 0x152   :  { %v500_v29 = vadd.f32 %v499_v28, %v498_v25  ;;  %v537_v31 = vpop.f32.mrb[1].mxu1 }
 0x153   :  { %v538_v32 = vadd.f32 %v537_v31, %v536_v26 }
 0x154   :  { %v202_v33 = vadd.f32 %v500_v29, %v464_v27  ;;  %v501_v34 = vpop.f32.mrb[2].mxu0 }
 0x155   :  { %v320_v35 = vadd.f32 %v538_v32, %v465_v30  ;;  %v539_v36 = vpop.f32.mrb[2].mxu1  ;;  %v502_v37 = vpop.f32.mrb[3].mxu0 }
 0x156   :  { %v210_v38 = vmax.f32 %v202_v33, 0.0  ;;  %v503_v39 = vadd.f32 %v502_v37, %v501_v34  ;;  %v540_v40 = vpop.f32.mrb[3].mxu1 }
 0x157   :  { %v328_v41 = vmax.f32 %v320_v35, 0.0  ;;  %v541_v42 = vadd.f32 %v540_v40, %v539_v36 }
 0x158   :  { %v207_v43 = vadd.f32 %v503_v39, %v464_v27 }
 0x159   :  { %v330_v44 = vmul.f32 %v328_v41, %v210_v38  ;;  %v325_v45 = vadd.f32 %v541_v42, %v465_v30 }
 0x15a   :  { %v211_v46 = vmax.f32 %v207_v43, 0.0 }
 0x15b   :  { %v329_v47 = vmax.f32 %v325_v45, 0.0  ;;  %441 = vmatmul.mubr.f32.vlgmr.msra.gmra.mrb[4].mxu0 %v330_v44 }
 0x15d   :  { %v331_v48 = vmul.f32 %v329_v47, %v211_v46 }
 0x15f   :  { %447 = vmatmul.mubr.f32.vlgmr.msra.gmra.mrb[4].mxu1 %v331_v48 }
 0x22e   :  { %v442_v56 = vpop.f32.mrb[4].mxu0 }
 0x22f   :  { %v443_v57 = vadd.f32 %v442_v56, %v369_v54  ;;  %v444_v58 = vpop.f32.mrb[5].mxu0 }
 0x230   :  { %v445_v59 = vadd.f32 %v444_v58, %v373_v55 }
 0x231   :  { %453 = vst [vmem:[%s933_s7] sm:$0xff] %v443_v57 }
 0x232   :  { %454 = vst [vmem:[%s933_s7 + $0x8] sm:$0xff] %v445_v59  ;;  %v448_v60 = vpop.f32.mrb[4].mxu1 }
 0x233   :  { %v449_v61 = vadd.f32 %v448_v60, %v369_v54  ;;  %v450_v62 = vpop.f32.mrb[5].mxu1 }
 0x234   :  { %v451_v63 = vadd.f32 %v450_v62, %v373_v55 }
 0x235   :  { %455 = vst [vmem:[%s933_s7 + $0x10] sm:$0xff] %v449_v61 }
 0x236   :  { %456 = vst [vmem:[%s933_s7 + $0x18] sm:$0xff] %v451_v63 }
 0x237   :  { %461 = vsyncpa [#allocation3], 1 }
 0x238   :  { %462 = vsyncpa [#allocation5], 1 }
 0x239   :  { %463 = vsyncpa [#allocation8], 1 }

</bundles_post_ra>
